<compile_context>
chip_gen: v7x
topology: tpu7x:2x2x1
jax: 0.10.0
libtpu: 0.0.40
codegen_flags: <defaults>
</compile_context>

<pallas_src>
import jax
import jax.numpy as jnp
from jax import lax
from jax.experimental import pallas as pl
from jax.experimental.pallas import tpu as pltpu


def _vmem_budgets():
    """Generation-aware (per-buffer x budget, scoped vmem limit) in bytes."""
    try:
        info = pltpu.get_tpu_info()
        cap = getattr(info, "vmem_capacity_bytes", 64 * 1024 * 1024)
    except Exception:
        cap = 64 * 1024 * 1024                      # conservative (v7x-sized)
    if cap >= 100 * 1024 * 1024:                    # v5e / v6e: 128 MiB VMEM
        return 20 * 1024 * 1024, 96 * 1024 * 1024
    return 12 * 1024 * 1024, 56 * 1024 * 1024       # v7x: 64 MiB per TC


def channel_gate(x, w1, b1, w2, b2, _hw_chunk_cap=None):
    """ChannelGate forward.

    x: (N, C, H, W); w1: (C//2, C, 1, 1); b1: (C//2,); w2: (C, C//2, 1, 1);
    b2: (C,).  Returns the gate, shape (N, C, 1, 1), dtype of x.
    `_hw_chunk_cap` is a test-only hook to force small spatial chunks.
    """
    N, C, H, W = x.shape
    Ch = C // 2
    HW = H * W
    itemsize = jnp.dtype(x.dtype).itemsize

    x3 = x.reshape(N, C, HW)

    per_buffer_budget, vmem_limit = _vmem_budgets()

    # ---- channel blocking: keep the contiguous DMA row (hw_chunk) long at
    # large C instead of letting it collapse toward 128 lanes.
    if C > 512 and C % 512 == 0:
        c_blk = 512
    elif C > 512 and C % 256 == 0:
        c_blk = 256
    else:
        c_blk = C
    n_c = C // c_blk

    # ---- lane-dense spatial chunk: full HW, or a multiple of 128 sized so one
    # x tile stays within the per-buffer budget (x is double-buffered).
    max_lanes = max(128, ((per_buffer_budget // (c_blk * itemsize)) // 128) * 128)
    if _hw_chunk_cap is not None:
        max_lanes = min(max_lanes, max(128, (_hw_chunk_cap // 128) * 128))
    hw_chunk = HW if HW <= max_lanes else max_lanes
    n_k = pl.cdiv(HW, hw_chunk)
    needs_mask = (HW % hw_chunk) != 0      # static: a partial tail chunk exists

    # ---- optional 2-way split of the HW range over a leading parallel axis so
    # both v7x TensorCores stream HBM when N*n_c == 1. No-op on 1-TC chips.
    n_split = 2 if (N * n_c == 1 and n_k >= 2) else 1
    n_kp = pl.cdiv(n_k, n_split)

    def pool_kernel(x_ref, o_ref):
        # x_ref: (1, c_blk, hw_chunk)  streamed spatial chunk (native dtype)
        # o_ref: (1, 1, 1, c_blk) f32  resident running max (accumulator)
        s = pl.program_id(0)
        k = pl.program_id(3)

        @pl.when(k == 0)
        def _():
            o_ref[...] = jnp.full(o_ref.shape, -jnp.inf, o_ref.dtype)

        def update(xt):
            cm = jnp.max(xt, axis=-1).astype(jnp.float32)      # (1, c_blk)
            o_ref[...] = jnp.maximum(o_ref[...], cm.reshape(o_ref.shape))

        if needs_mask:
            gk = s * n_kp + k                 # global chunk index (may be >= n_k)
            start = gk * hw_chunk
            is_tail = start + hw_chunk > HW   # crosses (or lies past) HW

            @pl.when(jnp.logical_not(is_tail))
            def _():
                update(x_ref[...])            # full chunk: 1 max per element

            @pl.when(is_tail)
            def _():
                # Lane-only iota vs scalar threshold, broadcast over channels.
                lane = lax.broadcasted_iota(jnp.int32, (1, 1, hw_chunk), 2)
                valid = HW - start            # <= 0 for clamped duplicate chunks
                xt = jnp.where(lane < valid, x_ref[...],
                               jnp.array(-jnp.inf, x_ref.dtype))
                update(xt)
        else:
            # No partial chunk exists; clamped duplicate chunks (odd n_k with a
            # split) are full valid chunks and max is idempotent.
            update(x_ref[...])

    pool_cost = pl.CostEstimate(
        flops=N * C * HW,                     # max compares
        transcendentals=0,
        bytes_accessed=N * C * HW * itemsize + n_split * N * C * 4,
    )

    partials = pl.pallas_call(
        pool_kernel,
        out_shape=jax.ShapeDtypeStruct((n_split, N, 1, C), jnp.float32),
        grid=(n_split, N, n_c, n_kp),
        in_specs=[
            pl.BlockSpec(
                (1, c_blk, hw_chunk),
                lambda s, n, c, k: (n, c, jnp.minimum(s * n_kp + k, n_k - 1)),
            ),
        ],
        out_specs=pl.BlockSpec((1, 1, 1, c_blk), lambda s, n, c, k: (s, n, 0, c)),
        compiler_params=pltpu.CompilerParams(
            dimension_semantics=("parallel", "parallel", "parallel", "arbitrary"),
            vmem_limit_bytes=vmem_limit,
        ),
        cost_estimate=pool_cost,
    )(x3)

    # ---- tiny MLP + sigmoid on the pooled vectors (batched over N), as its
    # own Pallas call so the f32 weights never occupy the streaming kernel's
    # double-buffered VMEM budget.
    w1t = w1.reshape(Ch, C).T.astype(jnp.float32)           # (C, C//2)
    w2t = w2.reshape(C, Ch).T.astype(jnp.float32)           # (C//2, C)
    b1r = b1.reshape(1, Ch).astype(jnp.float32)
    b2r = b2.reshape(1, C).astype(jnp.float32)

    def mlp_kernel(p_ref, w1_ref, b1_ref, w2_ref, b2_ref, o_ref):
        pooled = jnp.max(p_ref[...], axis=0).reshape(N, C)   # combine splits
        h = jnp.dot(pooled, w1_ref[...], preferred_element_type=jnp.float32)
        h = jnp.maximum(h + b1_ref[...], 0.0)
        z = jnp.dot(h, w2_ref[...], preferred_element_type=jnp.float32)
        z = z + b2_ref[...]
        o_ref[...] = jax.nn.sigmoid(z).astype(o_ref.dtype)

    gate = pl.pallas_call(
        mlp_kernel,
        out_shape=jax.ShapeDtypeStruct((N, C), x.dtype),
        compiler_params=pltpu.CompilerParams(vmem_limit_bytes=vmem_limit),
    )(partials, w1t, b1r, w2t, b2r)

    return gate.reshape(N, C, 1, 1)


def _reference(x, w1, b1, w2, b2):
    # Pure-JAX reference of the PyTorch forward for validation.
    N, C, H, W = x.shape
    Ch = C // 2
    pooled = jnp.max(x.reshape(N, C, H * W), axis=-1)            # (N, C)
    h = jnp.maximum(pooled @ w1.reshape(Ch, C).T + b1, 0.0)      # (N, C//2)
    z = h @ w2.reshape(C, Ch).T + b2                             # (N, C)
    return jax.nn.sigmoid(z).reshape(N, C, 1, 1)


if __name__ == "__main__":
    key = jax.random.PRNGKey(0)
    N, C, H, W = 2, 4, 16, 16
    Ch = C // 2

    k_x, k_w1, k_b1, k_w2, k_b2, k_x2 = jax.random.split(key, 6)
    x = jax.random.normal(k_x, (N, C, H, W), dtype=jnp.float32)

    # Deterministic "PyTorch-like" uniform init for the 1x1 convs.
    bound1 = 1.0 / (C ** 0.5)
    w1 = jax.random.uniform(k_w1, (Ch, C, 1, 1), minval=-bound1, maxval=bound1,
                            dtype=jnp.float32)
    b1 = jax.random.uniform(k_b1, (Ch,), minval=-bound1, maxval=bound1,
                            dtype=jnp.float32)
    bound2 = 1.0 / (Ch ** 0.5)
    w2 = jax.random.uniform(k_w2, (C, Ch, 1, 1), minval=-bound2, maxval=bound2,
                            dtype=jnp.float32)
    b2 = jax.random.uniform(k_b2, (C,), minval=-bound2, maxval=bound2,
                            dtype=jnp.float32)

    # Test 1: single-chunk fast path (no tail mask, no split).
    out = jax.block_until_ready(channel_gate(x, w1, b1, w2, b2))
    ref = _reference(x, w1, b1, w2, b2)
    assert out.shape == (N, C, 1, 1)
    assert jnp.allclose(out, ref, atol=1e-5, rtol=1e-5)

    # Test 2: force small spatial chunks so the gated tail-mask path and the
    # 2-way HW split (N * n_c == 1) are exercised and verified on-device.
    x2 = jax.random.normal(k_x2, (1, C, 16, 17), dtype=jnp.float32)  # HW=272
    out2 = jax.block_until_ready(
        channel_gate(x2, w1, b1, w2, b2, _hw_chunk_cap=128))
    ref2 = _reference(x2, w1, b1, w2, b2)
    assert out2.shape == (1, C, 1, 1)
    assert jnp.allclose(out2, ref2, atol=1e-5, rtol=1e-5)

    print("KERNEL_OK")
</pallas_src>

<mosaic_0001>
module attributes {stable_mosaic.version = 11 : i64} {
  func.func @pool_kernel(%arg0: i32, %arg1: i32, %arg2: i32, %arg3: i32, %arg4: memref<1x4x256xf32, #tpu.memory_space<vmem>>, %arg5: memref<1x1x1x4xf32, #tpu.memory_space<vmem>>) attributes {dimension_semantics = [#tpu.dimension_semantics<parallel>, #tpu.dimension_semantics<parallel>, #tpu.dimension_semantics<parallel>, #tpu.dimension_semantics<arbitrary>], iteration_bounds = array<i64: 1, 2, 1, 1>, scalar_prefetch = 0 : i64, scratch_operands = 0 : i64, tpu.core_type = #tpu.core_type<tc>, window_params = [{transform_indices = @transform_0, window_bounds = array<i64: 1, 4, 256>}, {transform_indices = @transform_1, window_bounds = array<i64: 1, 1, 1, 4>}]} {
    %c0_i32 = arith.constant 0 : i32
    %0 = arith.cmpi eq, %arg3, %c0_i32 : i32
    %1 = arith.extui %0 : i1 to i32
    %c0_i32_0 = arith.constant 0 : i32
    %2 = arith.cmpi ne, %1, %c0_i32_0 : i32
    scf.if %2 {
      %cst_11 = arith.constant 0xFF800000 : f32
      %9 = vector.broadcast %cst_11 : f32 to vector<1x1x1x4xf32>
      %c0_12 = arith.constant 0 : index
      %c0_13 = arith.constant 0 : index
      %c0_14 = arith.constant 0 : index
      %c0_15 = arith.constant 0 : index
      %10 = vector.load %arg5[%c0_12, %c0_13, %c0_14, %c0_15] : memref<1x1x1x4xf32, #tpu.memory_space<vmem>>, vector<1x1x1x4xf32>
      tpu.vector_store %arg5[%c0_12, %c0_13, %c0_14, %c0_15], %9 {strides = array<i32>} : memref<1x1x1x4xf32, #tpu.memory_space<vmem>>, vector<1x1x1x4xf32>,
    } else {
    }
    %c0 = arith.constant 0 : index
    %c0_1 = arith.constant 0 : index
    %c0_2 = arith.constant 0 : index
    %3 = vector.load %arg4[%c0, %c0_1, %c0_2] : memref<1x4x256xf32, #tpu.memory_space<vmem>>, vector<1x4x256xf32>
    %cst = arith.constant dense<0xFF800000> : vector<1x4xf32>
    %4 = vector.multi_reduction <maximumf>, %3, %cst [2] : vector<1x4x256xf32> to vector<1x4xf32>
    %c0_3 = arith.constant 0 : index
    %c0_4 = arith.constant 0 : index
    %c0_5 = arith.constant 0 : index
    %c0_6 = arith.constant 0 : index
    %5 = vector.load %arg5[%c0_3, %c0_4, %c0_5, %c0_6] : memref<1x1x1x4xf32, #tpu.memory_space<vmem>>, vector<1x1x1x4xf32>
    %6 = vector.shape_cast %4 : vector<1x4xf32> to vector<1x1x1x4xf32>
    %7 = arith.maximumf %5, %6 : vector<1x1x1x4xf32>
    %c0_7 = arith.constant 0 : index
    %c0_8 = arith.constant 0 : index
    %c0_9 = arith.constant 0 : index
    %c0_10 = arith.constant 0 : index
    %8 = vector.load %arg5[%c0_7, %c0_8, %c0_9, %c0_10] : memref<1x1x1x4xf32, #tpu.memory_space<vmem>>, vector<1x1x1x4xf32>
    tpu.vector_store %arg5[%c0_7, %c0_8, %c0_9, %c0_10], %7 {strides = array<i32>} : memref<1x1x1x4xf32, #tpu.memory_space<vmem>>, vector<1x1x1x4xf32>,
    return
  }
  func.func @transform_0(%arg0: i32, %arg1: i32, %arg2: i32, %arg3: i32) -> (i32, i32, i32) {
    %c1_i32 = arith.constant 1 : i32
    %0 = arith.muli %arg0, %c1_i32 : i32
    %1 = arith.addi %0, %arg3 : i32
    %c0_i32 = arith.constant 0 : i32
    %2 = arith.minsi %1, %c0_i32 : i32
    %c0_i32_0 = arith.constant 0 : i32
    return %arg1, %arg2, %2 : i32, i32, i32
  }
  func.func @transform_1(%arg0: i32, %arg1: i32, %arg2: i32, %arg3: i32) -> (i32, i32, i32, i32) {
    %c0_i32 = arith.constant 0 : i32
    %c0_i32_0 = arith.constant 0 : i32
    return %arg0, %arg1, %c0_i32, %arg2 : i32, i32, i32, i32
  }
}

</mosaic_0001>

<bundles_post_ra>
// kernel: tpu_custom_call.1
= control target key start
LH: loop header
LB: loop body
LE: loop exit
PB: predicated region body
PF: predicated region fallthrough
CT: control target
= control target key end

     0   :  { %6 = vsyncpa [#allocation3], 0  ;;  %s762_s0 = inlined_call_operand.hbm [shape: f32[2,4,256], index: 0, kind: input, shape index: {}]   ;;  %s763_s1 = inlined_call_operand.hbm [shape: f32[1,2,1,4], index: 1, kind: output, shape index: {}]  }
   0x1   :  { %8 = vsyncpa [#allocation3 + $0x1], 0 }
   0x2   :  { %9 = vsyncpa [#allocation4], 0 }
   0x3   :  { %11 = vsyncpa [#allocation4 + $0x1], 0  ;;  %s581_s6 = smov 0   ;;  %s583_s7 = smov 0  }
   0x4   :  { %s585_s8 = smov 0   ;;  %s587_s9 = smov 0  }
   0x5   :  { %s589_s10 = smov 0   ;;  %s591_s11 = smov 0  }
   0x6 LB: > { %s372_s12 = sadd.s32 4294967295, %s564_s11   ;;  %s373_s13 = sadd.s32 4294967294, %s564_s11   ;;  %s564_s11 = sphi %s591_s11, %s17_s11   ;;  %s560_s10 = sphi %s589_s10, %s779_s10   ;;  %s556_s9 = sphi %s587_s9, %s778_s9   ;;  %s552_s8 = sphi %s585_s8, %s777_s8   ;;  %s548_s7 = sphi %s583_s7, %s776_s7   ;;  %s544_s6 = sphi %s581_s6, %s775_s6  }
   0x7   : > { %s39_s14 = sadd.s32 1, %s560_s10  ;;  %s60_s15 = sadd.s32 1, %s552_s8 }
   0x8   : > { %p41_p0 = scmp.ge.s32.totalorder %s39_s14, 2  ;;  %p67_p1 = scmp.ne.s32.totalorder %s552_s8, %s548_s7 }
   0x9   : > { %p68_p2 = scmp.eq.s32.totalorder %s564_s11, 0  ;;  %p73_p3 = scmp.ne.s32.totalorder %s548_s7, %s544_s6 }
   0xa   : > { %s781_s14 = smov (%p41_p0, %s39_s14), 0  ;;  %p74_p5 = scmp.eq.s32.totalorder %s372_s12, 0 }
   0xb   : > { %p622_p4 = por %p68_p2, %p67_p1  ;;  %s53_s17 = ssub.s32 %s560_s10, %s781_s14 }
   0xc   : > { %p101_p6 = scmp.eq.s32.totalorder %s372_s12, 1  ;;  %p58_p7 = scmp.eq.s32.totalorder %s53_s17, 0 }
   0xd   : > { %p628_p8 = por %p74_p5, %p73_p3  ;;  %p107_p10 = scmp.eq.s32.totalorder %s373_s13, 1 }
   0xe   : > { %p632_p9 = por %p101_p6, %p67_p1  ;;  %p397_p13 = scmp.lt.s32.totalorder %s564_s11, 2 }
   0xf   : > { %s637_s20 = scalar_select %p58_p7, %s552_s8, %s60_s15  }
  0x10   : > { %s767_s19 = scalar_select %p632_p9, 1, 0 }
  0x11   : > { %p639_p11 = por %p107_p10, %p73_p3  ;;  %s127_s22 = sand.u32 1, %s552_s8  }
  0x12   : > { %s376_s23 = sshll.u32 %s127_s22, 3  ;;  %s384_s24 = sshll.u32 %s560_s10, 7 }
  0x13   : > { %s768_s21 = scalar_select %p639_p11, 1, 0 }
  0x14   : > { %s650_s27 = scalar_lea.hbm %s762_s0, %s384_s24  ;;  %s131_s28 = scalar_lea.vmem [#allocation2], %s376_s23 }
  0x15   : > { %s146_s29 = sshll.u32 %s131_s28, 4  ;;  %p656_p0 = pnand %p397_p13, %p622_p4  ;;  %s652_s29 = int_to_ptr.vmem [resolvable:$true] %s146_s29 }
  0x16   : > { %s128_s2 = scalar_lea.sflag [#allocation3], %s127_s22  ;;  %s452_s3 = scalar_lea.hbm %s650_s27, 128 }
  0x17   : > { %p453_p3 = scmp.ne.s32.totalorder %s650_s27, %s452_s3  ;;  %p454_p5 = pneg %p656_p0 }
  0x18   : > { %s457_s12 = scalar_lea.hbm %s762_s0, 256  ;;  %p458_p4 = scmp.lt.u32.totalorder %s650_s27, %s762_s0 }
  0x19   : > { %p455_p6 = pnand %p454_p5, %p453_p3  ;;  %p459_p10 = scmp.lt.u32.totalorder %s457_s12, %s452_s3 }
  0x1a   : > { %p461_p12 = scmp.lt.u32.totalorder %s452_s3, %s650_s27 }
  0x1b   : > { %p456_p7 = pneg %p455_p6  ;;  %p460_p13 = por %p459_p10, %p458_p4 }
  0x1d   : > { %p462_p1 = por %p461_p12, %p460_p13 }
  0x1f   : > { %p463_p2 = pnand %p462_p1, %p456_p7 }
  0x21   : > { %466 = shalt.err (!%p463_p2)
}
  0x22   : > { %s467_s16 = scalar_lea.vmem %s652_s29, 128  ;;  %s566_s17 = smov [#allocation2]  }
  0x23   : > { %p468_p3 = scmp.ne.s32.totalorder %s652_s29, %s467_s16  ;;  %s472_s22 = sshll.u32 %s566_s17, 4  ;;  %s473_s22 = int_to_ptr.vmem [resolvable:$false] %s472_s22 }
  0x24   : > { %s474_s23 = scalar_lea.vmem %s473_s22, 256  ;;  %p475_p9 = scmp.lt.s32.totalorder %s652_s29, %s473_s22 }
  0x25   : > { %p470_p6 = pnand %p468_p3, %p454_p5  ;;  %p476_p4 = scmp.lt.s32.totalorder %s474_s23, %s467_s16 }
  0x27   : > { %p471_p11 = pneg %p470_p6  ;;  %p477_p10 = por %p476_p4, %p475_p9 }
  0x29   : > { %p478_p12 = pnand %p477_p10, %p471_p11 }
  0x2b   : > { %481 = shalt.err (!%p478_p12)
}
  0x2c   : > { %392 = dma.hbm_to_vmem [thread:$0]  (!%p656_p0), %s650_s27, 128, %s652_s29, %s128_s2  }
  0x2d   : > { %p770_p1 = scmp.lt.s32.totalorder %s564_s11, 3  ;;  %p771_p2 = scmp.ge.s32.totalorder %s564_s11, 1 }
  0x2f   : > { %p152_p5 = pnand %p771_p2, %p770_p1 }
  0x30   : > { %s692_s24 = sand.u32 (!%p152_p5), 1, %s548_s7  }
  0x31   : > { %155 = sbr.rel (%p152_p5) target bundleno = 365 (0x16d), region = 24  ;;  %s380_s25 = sshll.u32 (!%p152_p5), %s692_s24, 3 }
  0x32   : > { %s158_s26 = scalar_lea.sflag (!%p152_p5), [#allocation3], %s692_s24  ;;  %s161_s28 = scalar_lea.vmem (!%p152_p5), [#allocation2], %s380_s25 }
  0x38   : > { %535 = dma.done.wait (%p628_p8), %s158_s26, 128  }
  0x39   : > { %537 = vsyncadd (%p628_p8), %s158_s26, 4294967168  ;;  %vm187_vm0 = vcmask 24576   ;;  %s701_s27 = scalar_lea.vmem [#allocation5], %s692_s24  ;;  %v567_v0 = vmov -inf   ;;  %vm193_vm1 = vcmask 1043456   ;;  %v189_v1 = vld [vmem:[%s161_s28] sm:$0xff]  ;;  %v201_v7 = vlaneseq }
  0x3a   : > { %188 = vst.msk [vmem:[%s701_s27] sm:$0x1] %vm187_vm0, %v567_v0  ;;  %v191_v2 = vcombine.high %v189_v1, %v189_v1  ;;  %v194_v3 = vsel %vm193_vm1, %v189_v1, -inf  ;;  %v568_v6 = vmov 0   ;;  %v569_v11 = vmov 1966171168  }
  0x3b   : > { %450 = vset.pattern.permute.xlu0 %v568_v6  ;;  %v202_v8 = vshrl.u32 %v201_v7, 7  ;;  %v245_v9 = vand.u32 127, %v201_v7  ;;  %v220_v12 = vunpack.c.l.s4 %v569_v11  ;;  %s381_s18 = sshll.u32 %s556_s9, 4  ;;  %s284_s29 = sshll.u32 %s701_s27, 4  ;;  %s713_s29 = int_to_ptr.vmem [resolvable:$true] %s284_s29 }
  0x3c   : > { %v195_v4 = vsel %vm193_vm1, %v191_v2, -inf  ;;  %s711_s3 = scalar_lea.hbm %s763_s1, %s381_s18  ;;  %s269_s4 = scalar_lea.sflag [#allocation4], %s692_s24 }
  0x3d   : > { %v196_v5 = vmax.f32 %v194_v3, %v195_v4  ;;  %v248_v10 = vsub.s32 %v245_v9, %v202_v8  ;;  %v221_v13 = vunpack.c.0.s8 %v220_v12  ;;  %v203_v14 = vsub.s32 0, %v202_v8  ;;  %s482_s5 = scalar_lea.vmem %s713_s29, 16  ;;  %p772_p9 = scmp.ne.s32.totalorder %s767_s19, 0 }
  0x3e   : > { %v207_v15 = vsub.s32 1, %v202_v8  ;;  %v211_v16 = vsub.s32 2, %v202_v8  ;;  %v215_v17 = vsub.s32 3, %v202_v8  ;;  %p483_p8 = scmp.ne.s32.totalorder %s713_s29, %s482_s5  ;;  %s570_s9 = smov [#allocation5]  }
  0x3f   : > { %197 = vmax.xlane.f32.xlu0 %v196_v5  ;;  %v224_v19 = vsub.s32 %v221_v13, %v202_v8  ;;  %s486_s12 = sshll.u32 %s570_s9, 4  ;;  %s487_s12 = int_to_ptr.vmem [resolvable:$false] %s486_s12 }
  0x40   : > { %p484_p11 = pnand %p483_p8, %p772_p9  ;;  %s488_s13 = scalar_lea.vmem %s487_s12, 32 }
  0x41   : > { %v199_v33 = vld [vmem:[%s701_s27] sm:$0x1]  ;;  %p489_p7 = scmp.lt.s32.totalorder %s713_s29, %s487_s12  ;;  %p490_p13 = scmp.lt.s32.totalorder %s488_s13, %s482_s5 }
  0x42   : > { %p485_p0 = pneg %p484_p11 }
  0x43   : > { %p491_p3 = por %p490_p13, %p489_p7 }
  0x45   : > { %p492_p6 = pnand %p491_p3, %p485_p0 }
  0xcc   : > { %v198_v18 = vpop.xlane.xlu0 %197 }
  0xcd   : > { %v204_v20 = vrot.slane %v198_v18, %v203_v14  ;;  %v208_v21 = vrot.slane %v198_v18, %v207_v15  ;;  %v212_v22 = vrot.slane %v198_v18, %v211_v16  ;;  %v216_v23 = vrot.slane %v198_v18, %v215_v17 }
  0xcf   : > { %v217_v24 = vcombine.low %v204_v20, %v208_v21  ;;  %v218_v25 = vcombine.low %v212_v22, %v216_v23 }
  0xd1   : > { %v225_v26 = vrot.slane %v217_v24, %v224_v19  ;;  %v232_v27 = vrot.slane %v218_v25, %v224_v19 }
  0xd3   : > { %v233_v28 = vcombine.low %v225_v26, %v232_v27 }
  0xd5   : > { %v240_v29 = vrot.slane %v233_v28, %v224_v19 }
  0xd7   : > { %242 = vperm.xlu0 %450, %v240_v29  }
 0x156   : > { %v243_v30 = vpop.permute.xlu0 %242 }
 0x157   : > { %v249_v31 = vrot.slane %v243_v30, %v248_v10 }
 0x159   : > { %v256_v32 = vrot.slane %v249_v31, %v224_v19 }
 0x15b   : > { %v263_v34 = vrot.slane %v256_v32, %v224_v19 }
 0x15d   : > { %v265_v35 = vmax.f32 %v199_v33, %v263_v34 }
 0x15f   : > { %267 = vst.msk [vmem:[%s701_s27] sm:$0x1] %vm187_vm0, %v265_v35 }
 0x160   : > { %495 = shalt.err (!%p492_p6)
}
 0x161   : > { %s496_s15 = scalar_lea.hbm %s711_s3, 16  ;;  %s500_s22 = scalar_lea.hbm %s763_s1, 32 }
 0x162   : > { %p497_p4 = scmp.ne.s32.totalorder %s711_s3, %s496_s15  ;;  %p501_p1 = scmp.lt.u32.totalorder %s711_s3, %s763_s1 }
 0x163   : > { %p502_p2 = scmp.lt.u32.totalorder %s500_s22, %s496_s15  ;;  %p504_p8 = scmp.lt.u32.totalorder %s496_s15, %s711_s3 }
 0x164   : > { %p498_p10 = pnand %p497_p4, %p772_p9 }
 0x165   : > { %p503_p5 = por %p502_p2, %p501_p1 }
 0x166   : > { %p499_p12 = pneg %p498_p10 }
 0x167   : > { %p505_p11 = por %p504_p8, %p503_p5 }
 0x169   : > { %p506_p0 = pnand %p505_p11, %p499_p12 }
 0x16b   : > { %509 = shalt.err (!%p506_p0)
}
 0x16c   : > { %387 = dma.vmem_to_hbm [thread:$0]  (%p772_p9), %s713_s29, 16, %s711_s3, %s269_s4  }
 0x16d PF: > { %s296_s25 = sand.u32 1, %s544_s6   ;;  %p773_p7 = scmp.ne.s32.totalorder %s768_s21, 0 }
 0x16e   : > { %p774_p13 = scmp.ge.s32.totalorder %s564_s11, 2  ;;  %s297_s26 = scalar_lea.sflag [#allocation4], %s296_s25 }
 0x170   : > { %p394_p3 = pnand %p774_p13, %p773_p7 }
 0x172   : > { %539 = dma.done.wait (!%p394_p3), %s297_s26, 16  }
 0x173   : > { %541 = vsyncadd (!%p394_p3), %s297_s26, 4294967280  ;;  %s17_s11 = sadd.s32 1, %s564_s11   ;;  %s775_s6 = smov %s548_s7 }
 0x174   : > { %p14_p6 = scmp.ge.s32.totalorder %s17_s11, 4   ;;  %s776_s7 = smov %s552_s8 }
 0x175   : > { %s777_s8 = smov %s637_s20  ;;  %s778_s9 = smov %s560_s10 }
 0x176   : > { %s779_s10 = smov %s781_s14  ;;  %16 = sbr.rel (!%p14_p6) target bundleno = 6 (0x6), region = 73 }
 0x17d   :  { %301 = vsyncpa [#allocation3], 1 }
 0x17e   :  { %303 = vsyncpa [#allocation3 + $0x1], 1 }
 0x17f   :  { %304 = vsyncpa [#allocation4], 1 }
 0x180   :  { %306 = vsyncpa [#allocation4 + $0x1], 1 }

</bundles_post_ra>
